<compile_context>
chip_gen: v5e
topology: v5e:2x2
jax: 0.10.0
libtpu: 0.0.40
codegen_flags: <defaults>
</compile_context>

<pallas_src>
import functools

import jax
import jax.numpy as jnp
from jax.experimental import pallas as pl
from jax.experimental.pallas import tpu as pltpu


def _round_up(a, m):
    return -(-a // m) * m


def _emb_kernel(col_ref, w_hi_ref, w_mid_ref, w_lo_ref, o1_ref, o2_ref):
    # col_ref : (G, P)        int32  packed one-hot column targets
    #                                (p*V + idx[g,p], or -1 for invalid/OOB)
    # w_*_ref : (P*V, 2*P*D)  bf16   block-diag fused tables, 3-chunk f32 split
    # o1_ref  : (G, P*D)      f32    emb1 rows, P tokens packed per row
    # o2_ref  : (G, P*D)      f32    emb2 rows, P tokens packed per row
    G, P = col_ref.shape
    K = w_hi_ref.shape[0]          # P * V
    half = o1_ref.shape[1]         # P * D

    cols = col_ref[...]                                        # (G, P)
    lane = jax.lax.broadcasted_iota(jnp.int32, (G, K), 1)      # (G, K)

    # Build the (G, K) one-hot: one 1 per valid token in its private V-wide
    # column slot.  Static unroll over P keeps everything in the native
    # (8,128) layout (no 3-D reshape / relayout); invalid targets (-1) never
    # match so OOB / padded tokens yield all-zero rows.
    hit = lane == cols[:, 0:1]
    for p in range(1, P):
        hit = jnp.logical_or(hit, lane == cols[:, p:p + 1])
    one_hot = hit.astype(jnp.bfloat16)                         # exact {0,1}

    # 3 bf16 weight chunks accumulated in f32: each dot gathers the chunk's
    # rows exactly (single nonzero product per output element), and the f32
    # sum reconstructs the original f32 table to ~1e-7 relative.
    acc = jnp.dot(one_hot, w_hi_ref[...], preferred_element_type=jnp.float32)
    acc = acc + jnp.dot(one_hot, w_mid_ref[...],
                        preferred_element_type=jnp.float32)
    acc = acc + jnp.dot(one_hot, w_lo_ref[...],
                        preferred_element_type=jnp.float32)

    # Split at a 128-lane-aligned boundary: register-level slice, two
    # unmasked lane-dense output streams.
    o1_ref[...] = acc[:, :half]
    o2_ref[...] = acc[:, half:]


def emb_model_forward(x_idx, w_emb1, w_emb2, *, tile_tokens=2048, pack=8):
    """x_idx: (B, S) integer indices; w_emb*: (V, D) f32 tables.

    Returns {'key': {'emb1': (B, S, D) f32, 'emb2': (B, S, D) f32}}.
    """
    B, S = x_idx.shape
    V, D = w_emb1.shape
    P = pack
    N = B * S

    # P tokens per packed row; rows must be sublane(8)-aligned -> 64-token align.
    tok_align = P * 8
    n_ceil = _round_up(max(N, 1), tok_align)
    tile = min(_round_up(tile_tokens, tok_align), n_ceil)
    # v7x: keep the "parallel" token axis at >= 2 grid steps when there are
    # enough tokens so both TensorCores get work (no effect on 1-TC chips).
    if n_ceil >= 2 * tok_align:
        tile = min(tile, _round_up(-(-n_ceil // 2), tok_align))
    n_pad = _round_up(n_ceil, tile)
    n_groups = n_pad // P
    tile_g = tile // P
    grid = (n_groups // tile_g,)

    # ---- index packing: P tokens/row, column target = p*V + idx (or -1) ----
    # TODO(synk): PyTorch nn.Embedding raises on out-of-range indices; here
    # they silently produce all-zero rows.
    idx = x_idx.reshape(N).astype(jnp.int32)
    idx = jnp.pad(idx, (0, n_pad - N))                  # pad with valid id 0
    idx = idx.reshape(n_groups, P)
    in_range = jnp.logical_and(idx >= 0, idx < V)
    slot_off = jnp.arange(P, dtype=jnp.int32)[None, :] * V
    col_tgt = jnp.where(in_range, idx + slot_off, -1)   # (n_groups, P)

    # ---- weights: block-diagonal token packing + table fusion --------------
    # kron(I_P, w): (P*V, P*D); fuse both tables along lanes -> (P*V, 2*P*D).
    eye_p = jnp.eye(P, dtype=w_emb1.dtype)
    w_cat = jnp.concatenate(
        [jnp.kron(eye_p, w_emb1), jnp.kron(eye_p, w_emb2)], axis=1)
    # 3-chunk bf16 split of the f32 tables (hi + mid + lo residuals).
    w_hi = w_cat.astype(jnp.bfloat16)
    r1 = w_cat - w_hi.astype(jnp.float32)
    w_mid = r1.astype(jnp.bfloat16)
    r2 = r1 - w_mid.astype(jnp.float32)
    w_lo = r2.astype(jnp.bfloat16)

    kw = 2 * P * D                                      # fused lane width
    cost = pl.CostEstimate(
        flops=3 * 2 * n_groups * (P * V) * kw,
        transcendentals=0,
        bytes_accessed=(n_groups * P * 4 + 3 * (P * V) * kw * 2
                        + 2 * n_groups * (P * D) * 4),
    )

    out1, out2 = pl.pallas_call(
        _emb_kernel,
        out_shape=(
            jax.ShapeDtypeStruct((n_groups, P * D), jnp.float32),
            jax.ShapeDtypeStruct((n_groups, P * D), jnp.float32),
        ),
        grid=grid,
        in_specs=[
            pl.BlockSpec((tile_g, P), lambda i: (i, 0)),      # packed targets
            pl.BlockSpec((P * V, kw), lambda i: (0, 0)),      # resident weights
            pl.BlockSpec((P * V, kw), lambda i: (0, 0)),
            pl.BlockSpec((P * V, kw), lambda i: (0, 0)),
        ],
        out_specs=(
            pl.BlockSpec((tile_g, P * D), lambda i: (i, 0)),  # emb1, lane-dense
            pl.BlockSpec((tile_g, P * D), lambda i: (i, 0)),  # emb2, lane-dense
        ),
        compiler_params=pltpu.CompilerParams(
            dimension_semantics=("parallel",),                # megacore-shardable
        ),
        cost_estimate=cost,
    )(col_tgt, w_hi, w_mid, w_lo)

    # (n_groups, P*D) -> (n_pad, D) is a contiguity-preserving reshape
    # (tokens were packed in row-major order): no column-split copies.
    emb1 = out1.reshape(n_pad, D)[:N].reshape(B, S, D)
    emb2 = out2.reshape(n_pad, D)[:N].reshape(B, S, D)
    return {"key": {"emb1": emb1, "emb2": emb2}}


if __name__ == "__main__":
    vocab, dim = 16, 32            # nn.Embedding(16, 32) x2
    B, S = 2, 8                    # small index tensor, like the test harness

    key = jax.random.PRNGKey(0)
    k_idx, k_w1, k_w2 = jax.random.split(key, 3)

    # Deterministic parameter init (matches nn.Embedding default N(0,1) dist).
    w_emb1 = jax.random.normal(k_w1, (vocab, dim), dtype=jnp.float32)
    w_emb2 = jax.random.normal(k_w2, (vocab, dim), dtype=jnp.float32)

    # Integer index input, shape (B, S), values in [0, vocab)
    x_idx = jax.random.randint(k_idx, (B, S), 0, vocab, dtype=jnp.int32)

    fwd = jax.jit(functools.partial(emb_model_forward))
    out = fwd(x_idx, w_emb1, w_emb2)
    jax.block_until_ready(out)

    # Correctness check vs. plain-JAX embedding gather.
    ref1 = w_emb1[x_idx]
    ref2 = w_emb2[x_idx]
    assert out["key"]["emb1"].shape == (B, S, dim)
    assert out["key"]["emb2"].shape == (B, S, dim)
    assert jnp.allclose(out["key"]["emb1"], ref1, atol=1e-6)
    assert jnp.allclose(out["key"]["emb2"], ref2, atol=1e-6)

    print("KERNEL_OK")
</pallas_src>

<mosaic_0001>
module attributes {stable_mosaic.version = 11 : i64} {
  func.func @_emb_kernel(%arg0: i32, %arg1: memref<8x8xi32, #tpu.memory_space<vmem>>, %arg2: memref<128x512xbf16, #tpu.memory_space<vmem>>, %arg3: memref<128x512xbf16, #tpu.memory_space<vmem>>, %arg4: memref<128x512xbf16, #tpu.memory_space<vmem>>, %arg5: memref<8x256xf32, #tpu.memory_space<vmem>>, %arg6: memref<8x256xf32, #tpu.memory_space<vmem>>) attributes {dimension_semantics = [#tpu.dimension_semantics<parallel>], iteration_bounds = array<i64: 1>, scalar_prefetch = 0 : i64, scratch_operands = 0 : i64, tpu.core_type = #tpu.core_type<tc>, window_params = [{transform_indices = @transform_0, window_bounds = array<i64: 8, 8>}, {pipeline_mode = #tpu.pipeline_mode<synchronous>, transform_indices = @transform_1, window_bounds = array<i64: 128, 512>}, {pipeline_mode = #tpu.pipeline_mode<synchronous>, transform_indices = @transform_2, window_bounds = array<i64: 128, 512>}, {pipeline_mode = #tpu.pipeline_mode<synchronous>, transform_indices = @transform_3, window_bounds = array<i64: 128, 512>}, {transform_indices = @transform_4, window_bounds = array<i64: 8, 256>}, {transform_indices = @transform_5, window_bounds = array<i64: 8, 256>}]} {
    %c0 = arith.constant 0 : index
    %c0_0 = arith.constant 0 : index
    %0 = vector.load %arg1[%c0, %c0_0] : memref<8x8xi32, #tpu.memory_space<vmem>>, vector<8x8xi32>
    %1 = tpu.iota {dimensions = array<i32: 1>} : vector<8x128xi32>
    %2 = vector.extract_strided_slice %0 {offsets = [0, 0], sizes = [8, 1], strides = [1, 1]} : vector<8x8xi32> to vector<8x1xi32>
    %3 = vector.broadcast %2 : vector<8x1xi32> to vector<8x128xi32>
    %4 = arith.cmpi eq, %1, %3 : vector<8x128xi32>
    %5 = vector.extract_strided_slice %0 {offsets = [0, 1], sizes = [8, 1], strides = [1, 1]} : vector<8x8xi32> to vector<8x1xi32>
    %6 = vector.broadcast %5 : vector<8x1xi32> to vector<8x128xi32>
    %7 = arith.cmpi eq, %1, %6 : vector<8x128xi32>
    %8 = arith.ori %4, %7 : vector<8x128xi1>
    %9 = vector.extract_strided_slice %0 {offsets = [0, 2], sizes = [8, 1], strides = [1, 1]} : vector<8x8xi32> to vector<8x1xi32>
    %10 = vector.broadcast %9 : vector<8x1xi32> to vector<8x128xi32>
    %11 = arith.cmpi eq, %1, %10 : vector<8x128xi32>
    %12 = arith.ori %8, %11 : vector<8x128xi1>
    %13 = vector.extract_strided_slice %0 {offsets = [0, 3], sizes = [8, 1], strides = [1, 1]} : vector<8x8xi32> to vector<8x1xi32>
    %14 = vector.broadcast %13 : vector<8x1xi32> to vector<8x128xi32>
    %15 = arith.cmpi eq, %1, %14 : vector<8x128xi32>
    %16 = arith.ori %12, %15 : vector<8x128xi1>
    %17 = vector.extract_strided_slice %0 {offsets = [0, 4], sizes = [8, 1], strides = [1, 1]} : vector<8x8xi32> to vector<8x1xi32>
    %18 = vector.broadcast %17 : vector<8x1xi32> to vector<8x128xi32>
    %19 = arith.cmpi eq, %1, %18 : vector<8x128xi32>
    %20 = arith.ori %16, %19 : vector<8x128xi1>
    %21 = vector.extract_strided_slice %0 {offsets = [0, 5], sizes = [8, 1], strides = [1, 1]} : vector<8x8xi32> to vector<8x1xi32>
    %22 = vector.broadcast %21 : vector<8x1xi32> to vector<8x128xi32>
    %23 = arith.cmpi eq, %1, %22 : vector<8x128xi32>
    %24 = arith.ori %20, %23 : vector<8x128xi1>
    %25 = vector.extract_strided_slice %0 {offsets = [0, 6], sizes = [8, 1], strides = [1, 1]} : vector<8x8xi32> to vector<8x1xi32>
    %26 = vector.broadcast %25 : vector<8x1xi32> to vector<8x128xi32>
    %27 = arith.cmpi eq, %1, %26 : vector<8x128xi32>
    %28 = arith.ori %24, %27 : vector<8x128xi1>
    %29 = vector.extract_strided_slice %0 {offsets = [0, 7], sizes = [8, 1], strides = [1, 1]} : vector<8x8xi32> to vector<8x1xi32>
    %30 = vector.broadcast %29 : vector<8x1xi32> to vector<8x128xi32>
    %31 = arith.cmpi eq, %1, %30 : vector<8x128xi32>
    %32 = arith.ori %28, %31 : vector<8x128xi1>
    %33 = arith.extui %32 : vector<8x128xi1> to vector<8x128xi32>
    %34 = arith.sitofp %33 : vector<8x128xi32> to vector<8x128xf32>
    %35 = arith.truncf %34 : vector<8x128xf32> to vector<8x128xbf16>
    %c0_1 = arith.constant 0 : index
    %c0_2 = arith.constant 0 : index
    %36 = vector.load %arg2[%c0_1, %c0_2] : memref<128x512xbf16, #tpu.memory_space<vmem>>, vector<128x512xbf16>
    %cst = arith.constant dense<0.000000e+00> : vector<8x512xf32>
    %37 = tpu.matmul %35, %36, %cst {dimension_numbers = #tpu.dot_dimension_numbers<[1], [0], [0], [1], [0, 0, 1, 1], [], []>} : vector<8x128xbf16>, vector<128x512xbf16>, vector<8x512xf32> -> vector<8x512xf32>
    %c0_3 = arith.constant 0 : index
    %c0_4 = arith.constant 0 : index
    %38 = vector.load %arg3[%c0_3, %c0_4] : memref<128x512xbf16, #tpu.memory_space<vmem>>, vector<128x512xbf16>
    %cst_5 = arith.constant dense<0.000000e+00> : vector<8x512xf32>
    %39 = tpu.matmul %35, %38, %cst_5 {dimension_numbers = #tpu.dot_dimension_numbers<[1], [0], [0], [1], [0, 0, 1, 1], [], []>} : vector<8x128xbf16>, vector<128x512xbf16>, vector<8x512xf32> -> vector<8x512xf32>
    %40 = arith.addf %37, %39 : vector<8x512xf32>
    %c0_6 = arith.constant 0 : index
    %c0_7 = arith.constant 0 : index
    %41 = vector.load %arg4[%c0_6, %c0_7] : memref<128x512xbf16, #tpu.memory_space<vmem>>, vector<128x512xbf16>
    %cst_8 = arith.constant dense<0.000000e+00> : vector<8x512xf32>
    %42 = tpu.matmul %35, %41, %cst_8 {dimension_numbers = #tpu.dot_dimension_numbers<[1], [0], [0], [1], [0, 0, 1, 1], [], []>} : vector<8x128xbf16>, vector<128x512xbf16>, vector<8x512xf32> -> vector<8x512xf32>
    %43 = arith.addf %40, %42 : vector<8x512xf32>
    %44 = vector.extract_strided_slice %43 {offsets = [0, 0], sizes = [8, 256], strides = [1, 1]} : vector<8x512xf32> to vector<8x256xf32>
    %c0_9 = arith.constant 0 : index
    %c0_10 = arith.constant 0 : index
    %45 = vector.load %arg5[%c0_9, %c0_10] : memref<8x256xf32, #tpu.memory_space<vmem>>, vector<8x256xf32>
    tpu.vector_store %arg5[%c0_9, %c0_10], %44 {strides = array<i32>} : memref<8x256xf32, #tpu.memory_space<vmem>>, vector<8x256xf32>,
    %46 = vector.extract_strided_slice %43 {offsets = [0, 256], sizes = [8, 256], strides = [1, 1]} : vector<8x512xf32> to vector<8x256xf32>
    %c0_11 = arith.constant 0 : index
    %c0_12 = arith.constant 0 : index
    %47 = vector.load %arg6[%c0_11, %c0_12] : memref<8x256xf32, #tpu.memory_space<vmem>>, vector<8x256xf32>
    tpu.vector_store %arg6[%c0_11, %c0_12], %46 {strides = array<i32>} : memref<8x256xf32, #tpu.memory_space<vmem>>, vector<8x256xf32>,
    return
  }
  func.func @transform_0(%arg0: i32) -> (i32, i32) {
    %c0_i32 = arith.constant 0 : i32
    %c0_i32_0 = arith.constant 0 : i32
    return %arg0, %c0_i32 : i32, i32
  }
  func.func @transform_1(%arg0: i32) -> (i32, i32) {
    %c0_i32 = arith.constant 0 : i32
    %c0_i32_0 = arith.constant 0 : i32
    %c0_i32_1 = arith.constant 0 : i32
    return %c0_i32, %c0_i32_0 : i32, i32
  }
  func.func @transform_2(%arg0: i32) -> (i32, i32) {
    %c0_i32 = arith.constant 0 : i32
    %c0_i32_0 = arith.constant 0 : i32
    %c0_i32_1 = arith.constant 0 : i32
    return %c0_i32, %c0_i32_0 : i32, i32
  }
  func.func @transform_3(%arg0: i32) -> (i32, i32) {
    %c0_i32 = arith.constant 0 : i32
    %c0_i32_0 = arith.constant 0 : i32
    %c0_i32_1 = arith.constant 0 : i32
    return %c0_i32, %c0_i32_0 : i32, i32
  }
  func.func @transform_4(%arg0: i32) -> (i32, i32) {
    %c0_i32 = arith.constant 0 : i32
    %c0_i32_0 = arith.constant 0 : i32
    return %arg0, %c0_i32 : i32, i32
  }
  func.func @transform_5(%arg0: i32) -> (i32, i32) {
    %c0_i32 = arith.constant 0 : i32
    %c0_i32_0 = arith.constant 0 : i32
    return %arg0, %c0_i32 : i32, i32
  }
}

</mosaic_0001>

<bundles_post_ra>
// kernel: emb_model_forward.1
= control target key start
LH: loop header
LB: loop body
LE: loop exit
PB: predicated region body
PF: predicated region fallthrough
CT: control target
= control target key end

     0   :  { %v1311_v0 = vmov 2   ;;  %v1312_v1 = vmov 0   ;;  %v1313_v6 = vmov 4   ;;  %v1314_v31 = vmov 3   ;;  %s1965_s0 = inlined_call_operand.vmem [shape: s32[8,8], index: 0, kind: input, shape index: {}]   ;;  %s1966_s2 = inlined_call_operand.vmem [shape: bf16[128,512], index: 2, kind: input, shape index: {}]   ;;  %s1967_s1 = inlined_call_operand.vmem [shape: bf16[128,512], index: 1, kind: input, shape index: {}]   ;;  %s1968_s3 = inlined_call_operand.vmem [shape: bf16[128,512], index: 3, kind: input, shape index: {}]   ;;  %s1969_s4 = inlined_call_operand.vmem [shape: f32[8,256], index: 4, kind: output, shape index: {0}]   ;;  %s1970_s5 = inlined_call_operand.vmem [shape: f32[8,256], index: 5, kind: output, shape index: {1}]  }
   0x1   :  { %1304 = vset.pattern.permute.xlu1 %v1311_v0  ;;  %1302 = vset.pattern.permute.xlu0 %v1312_v1  ;;  %v1353_v2 = vld [vmem:[%s1965_s0] sm:$0xff]  ;;  %v1259_v4 = vld [vmem:[%s1966_s2 + $0xec] sm:$0xf0]  ;;  %v929_v8 = vld [vmem:[%s1966_s2 + $0xf0] sm:$0xf0]  ;;  %v1315_v32 = vmov 1  }
   0x2   :  { %32 = vperm.xlu1 %1304, %v1353_v2   ;;  %23 = vperm.xlu0 %1302, %v1353_v2   ;;  %v927_v3 = vld [vmem:[%s1966_s2 + $0xe0] sm:$0xf]  ;;  %v1257_v5 = vld [vmem:[%s1966_s2 + $0xe4] sm:$0xf]  ;;  %v935_v9 = vld [vmem:[%s1966_s2 + $0xe8] sm:$0xf] }
   0x3   :  { %1306 = vset.pattern.permute.xlu2 %v1313_v6  ;;  %v928_v7 = vor.u32 %v1259_v4, %v927_v3  ;;  %v1260_v10 = vld [vmem:[%s1966_s2 + $0xf4] sm:$0xf0]  ;;  %v932_v11 = vor.u32 %v1257_v5, %v929_v8  ;;  %v1258_v13 = vld [vmem:[%s1966_s2 + $0xec] sm:$0xf]  ;;  %v937_v14 = vld [vmem:[%s1966_s2 + $0xf8] sm:$0xf0] }
   0x4   :  { %42 = vperm.xlu2 %1306, %v1353_v2   ;;  %v936_v12 = vor.u32 %v1260_v10, %v935_v9  ;;  %v911_v15 = vld [vmem:[%s1966_s2 + $0xc0] sm:$0xf]  ;;  %v940_v16 = vor.u32 %v1258_v13, %v937_v14  ;;  %v1255_v17 = vld [vmem:[%s1966_s2 + $0xcc] sm:$0xf0]  ;;  %v1253_v18 = vld [vmem:[%s1966_s2 + $0xc4] sm:$0xf] }
   0x5   :  { %288 = vmatpush.bf16.msra.mxu0 %v928_v7  ;;  %v913_v19 = vld [vmem:[%s1966_s2 + $0xd0] sm:$0xf0]  ;;  %301 = vmatpush.bf16.msra.mxu1 %v932_v11  ;;  %v912_v20 = vor.u32 %v1255_v17, %v911_v15  ;;  %v919_v21 = vld [vmem:[%s1966_s2 + $0xc8] sm:$0xf]  ;;  %v1256_v22 = vld [vmem:[%s1966_s2 + $0xd4] sm:$0xf0] }
   0x6   :  { %314 = vmatpush.bf16.msra.mxu2 %v936_v12  ;;  %v1254_v23 = vld [vmem:[%s1966_s2 + $0xcc] sm:$0xf]  ;;  %327 = vmatpush.bf16.msra.mxu3 %v940_v16  ;;  %v921_v24 = vld [vmem:[%s1966_s2 + $0xd8] sm:$0xf0]  ;;  %v895_v25 = vld [vmem:[%s1966_s2 + $0xa0] sm:$0xf]  ;;  %v916_v27 = vor.u32 %v1253_v18, %v913_v19  ;;  %v920_v28 = vor.u32 %v1256_v22, %v919_v21 }
   0x7   :  { %v1251_v26 = vld [vmem:[%s1966_s2 + $0xac] sm:$0xf0]  ;;  %v1249_v29 = vld [vmem:[%s1966_s2 + $0xa4] sm:$0xf]  ;;  %v897_v30 = vld [vmem:[%s1966_s2 + $0xb0] sm:$0xf0]  ;;  %v924_v33 = vor.u32 %v1254_v23, %v921_v24 }
   0x8   :  { %v896_v34 = vor.u32 %v1251_v26, %v895_v25  ;;  %v903_v35 = vld [vmem:[%s1966_s2 + $0xa8] sm:$0xf]  ;;  %v1252_v36 = vld [vmem:[%s1966_s2 + $0xb4] sm:$0xf0]  ;;  %v1250_v37 = vld [vmem:[%s1966_s2 + $0xac] sm:$0xf]  ;;  %v900_v42 = vor.u32 %v1249_v29, %v897_v30 }
   0x9   :  { %289 = vmatpush.bf16.msra.mxu0 %v912_v20  ;;  %v905_v38 = vld [vmem:[%s1966_s2 + $0xb8] sm:$0xf0]  ;;  %v879_v39 = vld [vmem:[%s1966_s2 + $0x80] sm:$0xf]  ;;  %v1247_v40 = vld [vmem:[%s1966_s2 + $0x8c] sm:$0xf0]  ;;  %302 = vmatpush.bf16.msra.mxu1 %v916_v27  ;;  %v904_v43 = vor.u32 %v1252_v36, %v903_v35 }
   0xa   :  { %1305 = vset.pattern.permute.xlu1 %v1314_v31  ;;  %1303 = vset.pattern.permute.xlu0 %v1315_v32  ;;  %v1316_v41 = vmov 5   ;;  %v1245_v44 = vld [vmem:[%s1966_s2 + $0x84] sm:$0xf]  ;;  %v881_v45 = vld [vmem:[%s1966_s2 + $0x90] sm:$0xf0]  ;;  %v908_v46 = vor.u32 %v1250_v37, %v905_v38  ;;  %v880_v47 = vor.u32 %v1247_v40, %v879_v39  ;;  %v1317_v61 = vmov 6  }
   0xb   :  { %37 = vperm.xlu1 %1305, %v1353_v2   ;;  %27 = vperm.xlu0 %1303, %v1353_v2   ;;  %v887_v48 = vld [vmem:[%s1966_s2 + $0x88] sm:$0xf]  ;;  %v1248_v49 = vld [vmem:[%s1966_s2 + $0x94] sm:$0xf0]  ;;  %v1246_v50 = vld [vmem:[%s1966_s2 + $0x8c] sm:$0xf]  ;;  %v884_v52 = vor.u32 %v1245_v44, %v881_v45 }
   0xc   :  { %1307 = vset.pattern.permute.xlu2 %v1316_v41  ;;  %315 = vmatpush.bf16.msra.mxu2 %v920_v28  ;;  %v889_v51 = vld [vmem:[%s1966_s2 + $0x98] sm:$0xf0]  ;;  %v863_v53 = vld [vmem:[%s1966_s2 + $0x60] sm:$0xf]  ;;  %v1243_v54 = vld [vmem:[%s1966_s2 + $0x6c] sm:$0xf0]  ;;  %v888_v55 = vor.u32 %v1248_v49, %v887_v48 }
   0xd   :  { %47 = vperm.xlu2 %1307, %v1353_v2   ;;  %328 = vmatpush.bf16.msra.mxu3 %v924_v33  ;;  %v1241_v56 = vld [vmem:[%s1966_s2 + $0x64] sm:$0xf]  ;;  %v865_v57 = vld [vmem:[%s1966_s2 + $0x70] sm:$0xf0]  ;;  %v892_v58 = vor.u32 %v1246_v50, %v889_v51  ;;  %v871_v59 = vld [vmem:[%s1966_s2 + $0x68] sm:$0xf]  ;;  %v864_v62 = vor.u32 %v1243_v54, %v863_v53 }
   0xe   :  { %290 = vmatpush.bf16.msra.mxu0 %v896_v34  ;;  %303 = vmatpush.bf16.msra.mxu1 %v900_v42  ;;  %v1244_v60 = vld [vmem:[%s1966_s2 + $0x74] sm:$0xf0]  ;;  %v1242_v63 = vld [vmem:[%s1966_s2 + $0x6c] sm:$0xf]  ;;  %v873_v0 = vld [vmem:[%s1966_s2 + $0x78] sm:$0xf0]  ;;  %v868_v3 = vor.u32 %v1241_v56, %v865_v57 }
   0xf   :  { %v1318_v1 = vmov 7   ;;  %v847_v4 = vld [vmem:[%s1966_s2 + $0x40] sm:$0xf]  ;;  %v1239_v5 = vld [vmem:[%s1966_s2 + $0x4c] sm:$0xf0]  ;;  %v872_v6 = vor.u32 %v1244_v60, %v871_v59  ;;  %v876_v9 = vor.u32 %v1242_v63, %v873_v0 }
  0x10   :  { %316 = vmatpush.bf16.msra.mxu2 %v904_v43  ;;  %v1237_v7 = vld [vmem:[%s1966_s2 + $0x44] sm:$0xf]  ;;  %v849_v8 = vld [vmem:[%s1966_s2 + $0x50] sm:$0xf0]  ;;  %v855_v10 = vld [vmem:[%s1966_s2 + $0x48] sm:$0xf]  ;;  %v848_v12 = vor.u32 %v1239_v5, %v847_v4 }
  0x11   :  { %329 = vmatpush.bf16.msra.mxu3 %v908_v46  ;;  %v1240_v11 = vld [vmem:[%s1966_s2 + $0x54] sm:$0xf0]  ;;  %v1238_v13 = vld [vmem:[%s1966_s2 + $0x4c] sm:$0xf]  ;;  %v852_v14 = vor.u32 %v1237_v7, %v849_v8  ;;  %v831_v15 = vld [vmem:[%s1966_s2 + $0x20] sm:$0xf] }
  0x12   :  { %291 = vmatpush.bf16.msra.mxu0 %v880_v47  ;;  %304 = vmatpush.bf16.msra.mxu1 %v884_v52  ;;  %v1235_v16 = vld [vmem:[%s1966_s2 + $0x2c] sm:$0xf0]  ;;  %v856_v17 = vor.u32 %v1240_v11, %v855_v10  ;;  %v1233_v18 = vld [vmem:[%s1966_s2 + $0x24] sm:$0xf]  ;;  %v833_v19 = vld [vmem:[%s1966_s2 + $0x30] sm:$0xf0] }
  0x13   :  { %1308 = vset.pattern.permute.xlu1 %v1317_v61  ;;  %1310 = vset.pattern.permute.xlu0 %v1318_v1  ;;  %v839_v21 = vld [vmem:[%s1966_s2 + $0x28] sm:$0xf]  ;;  %v1236_v22 = vld [vmem:[%s1966_s2 + $0x34] sm:$0xf0]  ;;  %v1234_v23 = vld [vmem:[%s1966_s2 + $0x2c] sm:$0xf]  ;;  %v832_v24 = vor.u32 %v1235_v16, %v831_v15  ;;  %v836_v28 = vor.u32 %v1233_v18, %v833_v19 }
  0x14   :  { %52 = vperm.xlu1 %1308, %v1353_v2   ;;  %317 = vmatpush.bf16.msra.mxu2 %v888_v55  ;;  %v841_v25 = vld [vmem:[%s1966_s2 + $0x38] sm:$0xf0]  ;;  %v815_v26 = vld [vmem:[%s1966_s2] sm:$0xf]  ;;  %v1231_v27 = vld [vmem:[%s1966_s2 + $0xc] sm:$0xf0]  ;;  %v840_v32 = vor.u32 %v1236_v22, %v839_v21 }
  0x15   :  { %1309 = vset.pattern.permute.xlu2 %v1318_v1  ;;  %330 = vmatpush.bf16.msra.mxu3 %v892_v58  ;;  %v1229_v29 = vld [vmem:[%s1966_s2 + $0x4] sm:$0xf]  ;;  %v817_v30 = vld [vmem:[%s1966_s2 + $0x10] sm:$0xf0]  ;;  %v823_v31 = vld [vmem:[%s1966_s2 + $0x8] sm:$0xf]  ;;  %v844_v36 = vor.u32 %v1234_v23, %v841_v25  ;;  %v816_v40 = vor.u32 %v1231_v27, %v815_v26 }
  0x16   :  { %57 = vperm.xlu2 %1309, %v1353_v2   ;;  %292 = vmatpush.bf16.msra.mxu0 %v864_v62  ;;  %v857_v2 = vld [vmem:[%s1966_s2 + $0x58] sm:$0xf0]  ;;  %v1232_v33 = vld [vmem:[%s1966_s2 + $0x14] sm:$0xf0]  ;;  %v1055_v34 = vld [vmem:[%s1967_s1 + $0xe0] sm:$0xf]  ;;  %v820_v44 = vor.u32 %v1229_v29, %v817_v30 }
  0x17   :  { %305 = vmatpush.bf16.msra.mxu1 %v868_v3  ;;  %v860_v20 = vor.u32 %v1238_v13, %v857_v2  ;;  %v1227_v35 = vld [vmem:[%s1967_s1 + $0xec] sm:$0xf0]  ;;  %v1230_v37 = vld [vmem:[%s1966_s2 + $0xc] sm:$0xf]  ;;  %v1225_v38 = vld [vmem:[%s1967_s1 + $0xe4] sm:$0xf]  ;;  %v824_v48 = vor.u32 %v1232_v33, %v823_v31 }
  0x18   :  { %318 = vmatpush.bf16.msra.mxu2 %v872_v6  ;;  %v1057_v39 = vld [vmem:[%s1967_s1 + $0xf0] sm:$0xf0]  ;;  %v825_v41 = vld [vmem:[%s1966_s2 + $0x18] sm:$0xf0]  ;;  %v1063_v42 = vld [vmem:[%s1967_s1 + $0xe8] sm:$0xf]  ;;  %v1056_v45 = vor.u32 %v1227_v35, %v1055_v34 }
  0x19   :  { %331 = vmatpush.bf16.msra.mxu3 %v876_v9  ;;  %v1228_v43 = vld [vmem:[%s1967_s1 + $0xf4] sm:$0xf0]  ;;  %v1226_v46 = vld [vmem:[%s1967_s1 + $0xec] sm:$0xf]  ;;  %v1065_v47 = vld [vmem:[%s1967_s1 + $0xf8] sm:$0xf0]  ;;  %v1060_v49 = vor.u32 %v1225_v38, %v1057_v39  ;;  %v828_v50 = vor.u32 %v1230_v37, %v825_v41 }
  0x1a   :  { %293 = vmatpush.bf16.msra.mxu0 %v848_v12  ;;  %v1064_v51 = vor.u32 %v1228_v43, %v1063_v42  ;;  %v1068_v52 = vor.u32 %v1226_v46, %v1065_v47  ;;  %v1039_v53 = vld [vmem:[%s1967_s1 + $0xc0] sm:$0xf]  ;;  %v1223_v54 = vld [vmem:[%s1967_s1 + $0xcc] sm:$0xf0]  ;;  %v1221_v55 = vld [vmem:[%s1967_s1 + $0xc4] sm:$0xf] }
  0x1b   :  { %306 = vmatpush.bf16.msra.mxu1 %v852_v14  ;;  %v1040_v56 = vor.u32 %v1223_v54, %v1039_v53  ;;  %v1041_v57 = vld [vmem:[%s1967_s1 + $0xd0] sm:$0xf0]  ;;  %v1047_v58 = vld [vmem:[%s1967_s1 + $0xc8] sm:$0xf]  ;;  %v1224_v59 = vld [vmem:[%s1967_s1 + $0xd4] sm:$0xf0] }
  0x1c   :  { %319 = vmatpush.bf16.msra.mxu2 %v856_v17  ;;  %v1044_v60 = vor.u32 %v1221_v55, %v1041_v57  ;;  %v1048_v61 = vor.u32 %v1224_v59, %v1047_v58  ;;  %v1222_v62 = vld [vmem:[%s1967_s1 + $0xcc] sm:$0xf]  ;;  %v1049_v63 = vld [vmem:[%s1967_s1 + $0xd8] sm:$0xf0]  ;;  %v1023_v1 = vld [vmem:[%s1967_s1 + $0xa0] sm:$0xf] }
  0x1d   :  { %332 = vmatpush.bf16.msra.mxu3 %v860_v20  ;;  %v1052_v0 = vor.u32 %v1222_v62, %v1049_v63  ;;  %v1219_v3 = vld [vmem:[%s1967_s1 + $0xac] sm:$0xf0]  ;;  %v1217_v4 = vld [vmem:[%s1967_s1 + $0xa4] sm:$0xf]  ;;  %v1025_v6 = vld [vmem:[%s1967_s1 + $0xb0] sm:$0xf0] }
  0x1e   :  { %294 = vmatpush.bf16.msra.mxu0 %v832_v24  ;;  %v1024_v5 = vor.u32 %v1219_v3, %v1023_v1  ;;  %v1031_v7 = vld [vmem:[%s1967_s1 + $0xa8] sm:$0xf]  ;;  %v1220_v8 = vld [vmem:[%s1967_s1 + $0xb4] sm:$0xf0]  ;;  %v1028_v9 = vor.u32 %v1217_v4, %v1025_v6  ;;  %v1218_v11 = vld [vmem:[%s1967_s1 + $0xac] sm:$0xf] }
  0x1f   :  { %307 = vmatpush.bf16.msra.mxu1 %v836_v28  ;;  %v1032_v10 = vor.u32 %v1220_v8, %v1031_v7  ;;  %v1033_v12 = vld [vmem:[%s1967_s1 + $0xb8] sm:$0xf0]  ;;  %v1007_v13 = vld [vmem:[%s1967_s1 + $0x80] sm:$0xf]  ;;  %v1215_v14 = vld [vmem:[%s1967_s1 + $0x8c] sm:$0xf0] }
  0x20   :  { %320 = vmatpush.bf16.msra.mxu2 %v840_v32  ;;  %v1036_v2 = vor.u32 %v1218_v11, %v1033_v12  ;;  %v1213_v15 = vld [vmem:[%s1967_s1 + $0x84] sm:$0xf]  ;;  %v1009_v16 = vld [vmem:[%s1967_s1 + $0x90] sm:$0xf0]  ;;  %v1008_v17 = vor.u32 %v1215_v14, %v1007_v13  ;;  %v1015_v18 = vld [vmem:[%s1967_s1 + $0x88] sm:$0xf]  ;;  %v20_v13 = vlaneseq }
  0x21   :  { %333 = vmatpush.bf16.msra.mxu3 %v844_v36  ;;  %v1216_v19 = vld [vmem:[%s1967_s1 + $0x94] sm:$0xf0]  ;;  %v1214_v20 = vld [vmem:[%s1967_s1 + $0x8c] sm:$0xf]  ;;  %v1012_v21 = vor.u32 %v1213_v15, %v1009_v16  ;;  %v1017_v23 = vld [vmem:[%s1967_s1 + $0x98] sm:$0xf0] }
  0x22   :  { %295 = vmatpush.bf16.msra.mxu0 %v816_v40  ;;  %v1016_v22 = vor.u32 %v1216_v19, %v1015_v18  ;;  %v1020_v24 = vor.u32 %v1214_v20, %v1017_v23  ;;  %v991_v25 = vld [vmem:[%s1967_s1 + $0x60] sm:$0xf]  ;;  %v1211_v26 = vld [vmem:[%s1967_s1 + $0x6c] sm:$0xf0]  ;;  %v1209_v27 = vld [vmem:[%s1967_s1 + $0x64] sm:$0xf] }
  0x23   :  { %308 = vmatpush.bf16.msra.mxu1 %v820_v44  ;;  %v992_v28 = vor.u32 %v1211_v26, %v991_v25  ;;  %v993_v29 = vld [vmem:[%s1967_s1 + $0x70] sm:$0xf0]  ;;  %v999_v30 = vld [vmem:[%s1967_s1 + $0x68] sm:$0xf]  ;;  %v1212_v31 = vld [vmem:[%s1967_s1 + $0x74] sm:$0xf0] }
  0x24   :  { %321 = vmatpush.bf16.msra.mxu2 %v824_v48  ;;  %v996_v32 = vor.u32 %v1209_v27, %v993_v29  ;;  %v1000_v33 = vor.u32 %v1212_v31, %v999_v30  ;;  %v1210_v34 = vld [vmem:[%s1967_s1 + $0x6c] sm:$0xf]  ;;  %v1001_v35 = vld [vmem:[%s1967_s1 + $0x78] sm:$0xf0]  ;;  %v975_v37 = vld [vmem:[%s1967_s1 + $0x40] sm:$0xf] }
  0x25   :  { %334 = vmatpush.bf16.msra.mxu3 %v828_v50  ;;  %v1004_v36 = vor.u32 %v1210_v34, %v1001_v35  ;;  %v1207_v38 = vld [vmem:[%s1967_s1 + $0x4c] sm:$0xf0]  ;;  %v1205_v39 = vld [vmem:[%s1967_s1 + $0x44] sm:$0xf]  ;;  %v977_v41 = vld [vmem:[%s1967_s1 + $0x50] sm:$0xf0] }
  0x26   :  { %500 = vmatpush.bf16.msrb.mxu0 %v1056_v45  ;;  %v976_v40 = vor.u32 %v1207_v38, %v975_v37  ;;  %v983_v42 = vld [vmem:[%s1967_s1 + $0x48] sm:$0xf]  ;;  %v1208_v43 = vld [vmem:[%s1967_s1 + $0x54] sm:$0xf0]  ;;  %v980_v44 = vor.u32 %v1205_v39, %v977_v41  ;;  %v1206_v46 = vld [vmem:[%s1967_s1 + $0x4c] sm:$0xf] }
  0x27   :  { %513 = vmatpush.bf16.msrb.mxu1 %v1060_v49  ;;  %v984_v45 = vor.u32 %v1208_v43, %v983_v42  ;;  %v985_v47 = vld [vmem:[%s1967_s1 + $0x58] sm:$0xf0]  ;;  %v959_v49 = vld [vmem:[%s1967_s1 + $0x20] sm:$0xf]  ;;  %v1203_v50 = vld [vmem:[%s1967_s1 + $0x2c] sm:$0xf0] }
  0x28   :  { %526 = vmatpush.bf16.msrb.mxu2 %v1064_v51  ;;  %v988_v48 = vor.u32 %v1206_v46, %v985_v47  ;;  %v1201_v51 = vld [vmem:[%s1967_s1 + $0x24] sm:$0xf]  ;;  %v961_v53 = vld [vmem:[%s1967_s1 + $0x30] sm:$0xf0]  ;;  %v967_v54 = vld [vmem:[%s1967_s1 + $0x28] sm:$0xf] }
  0x29   :  { %539 = vmatpush.bf16.msrb.mxu3 %v1068_v52  ;;  %v960_v52 = vor.u32 %v1203_v50, %v959_v49  ;;  %v1204_v55 = vld [vmem:[%s1967_s1 + $0x34] sm:$0xf0]  ;;  %v1202_v58 = vld [vmem:[%s1967_s1 + $0x2c] sm:$0xf]  ;;  %v969_v59 = vld [vmem:[%s1967_s1 + $0x38] sm:$0xf0] }
  0x2a   :  { %501 = vmatpush.bf16.msrb.mxu0 %v1040_v56  ;;  %v964_v56 = vor.u32 %v1201_v51, %v961_v53  ;;  %v968_v57 = vor.u32 %v1204_v55, %v967_v54  ;;  %v1199_v62 = vld [vmem:[%s1967_s1 + $0xc] sm:$0xf0]  ;;  %v1197_v63 = vld [vmem:[%s1967_s1 + $0x4] sm:$0xf]  ;;  %v945_v1 = vld [vmem:[%s1967_s1 + $0x10] sm:$0xf0] }
  0x2b   :  { %514 = vmatpush.bf16.msrb.mxu1 %v1044_v60  ;;  %v972_v60 = vor.u32 %v1202_v58, %v969_v59  ;;  %v951_v3 = vld [vmem:[%s1967_s1 + $0x8] sm:$0xf]  ;;  %v1200_v4 = vld [vmem:[%s1967_s1 + $0x14] sm:$0xf0]  ;;  %v1198_v7 = vld [vmem:[%s1967_s1 + $0xc] sm:$0xf] }
  0x2c   :  { %527 = vmatpush.bf16.msrb.mxu2 %v1048_v61  ;;  %v943_v61 = vld [vmem:[%s1967_s1] sm:$0xf]  ;;  %v952_v6 = vor.u32 %v1200_v4, %v951_v3  ;;  %v953_v8 = vld [vmem:[%s1967_s1 + $0x18] sm:$0xf0]  ;;  %v21_v14 = vand.u32 127, %v20_v13  ;;  %v1319_v27 = vmov 0.0  }
  0x2d   :  { %540 = vmatpush.bf16.msrb.mxu3 %v1052_v0  ;;  %v944_v0 = vor.u32 %v1199_v62, %v943_v61  ;;  %v1183_v19 = vld [vmem:[%s1968_s3 + $0xe0] sm:$0xf]  ;;  %v1291_v20 = vld [vmem:[%s1968_s3 + $0xec] sm:$0xf0]  ;;  %v1191_v23 = vld [vmem:[%s1968_s3 + $0xe8] sm:$0xf] }
  0x2e   :  { %502 = vmatpush.bf16.msrb.mxu0 %v1024_v5  ;;  %v948_v5 = vor.u32 %v1197_v63, %v945_v1  ;;  %v1290_v25 = vld [vmem:[%s1968_s3 + $0xec] sm:$0xf]  ;;  %v1193_v26 = vld [vmem:[%s1968_s3 + $0xf8] sm:$0xf0]  ;;  %v1184_v30 = vor.u32 %v1291_v20, %v1183_v19  ;;  %v1169_v37 = vld [vmem:[%s1968_s3 + $0xd0] sm:$0xf0] }
  0x2f   :  { %515 = vmatpush.bf16.msrb.mxu1 %v1028_v9  ;;  %v956_v9 = vor.u32 %v1198_v7, %v953_v8  ;;  %v1196_v35 = vor.u32 %v1290_v25, %v1193_v26  ;;  %v1175_v38 = vld [vmem:[%s1968_s3 + $0xc8] sm:$0xf]  ;;  %v1288_v39 = vld [vmem:[%s1968_s3 + $0xd4] sm:$0xf0]  ;;  %v1177_v41 = vld [vmem:[%s1968_s3 + $0xd8] sm:$0xf0] }
  0x30   :  { %528 = vmatpush.bf16.msrb.mxu2 %v1032_v10  ;;  %v1176_v46 = vor.u32 %v1288_v39, %v1175_v38  ;;  %v1153_v49 = vld [vmem:[%s1968_s3 + $0xb0] sm:$0xf0]  ;;  %v1159_v50 = vld [vmem:[%s1968_s3 + $0xa8] sm:$0xf]  ;;  %v1284_v51 = vld [vmem:[%s1968_s3 + $0xb4] sm:$0xf0] }
  0x31   :  { %541 = vmatpush.bf16.msrb.mxu3 %v1036_v2  ;;  %v1161_v53 = vld [vmem:[%s1968_s3 + $0xb8] sm:$0xf0]  ;;  %v1160_v58 = vor.u32 %v1284_v51, %v1159_v50  ;;  %v1137_v61 = vld [vmem:[%s1968_s3 + $0x90] sm:$0xf0]  ;;  %v1143_v62 = vld [vmem:[%s1968_s3 + $0x88] sm:$0xf] }
  0x32   :  { %503 = vmatpush.bf16.msrb.mxu0 %v1008_v17  ;;  %v1280_v63 = vld [vmem:[%s1968_s3 + $0x94] sm:$0xf0]  ;;  %v1145_v1 = vld [vmem:[%s1968_s3 + $0x98] sm:$0xf0]  ;;  %v1274_v13 = vld [vmem:[%s1968_s3 + $0x6c] sm:$0xf] }
  0x33   :  { %516 = vmatpush.bf16.msrb.mxu1 %v1012_v21  ;;  %v1289_v21 = vld [vmem:[%s1968_s3 + $0xe4] sm:$0xf]  ;;  %v1144_v7 = vor.u32 %v1280_v63, %v1143_v62  ;;  %v1113_v25 = vld [vmem:[%s1968_s3 + $0x58] sm:$0xf0] }
  0x34   :  { %529 = vmatpush.bf16.msrb.mxu2 %v1016_v22  ;;  %v1185_v22 = vld [vmem:[%s1968_s3 + $0xf0] sm:$0xf0]  ;;  %v1269_v20 = vld [vmem:[%s1968_s3 + $0x44] sm:$0xf]  ;;  %v1097_v38 = vld [vmem:[%s1968_s3 + $0x38] sm:$0xf0] }
  0x35   :  { %542 = vmatpush.bf16.msrb.mxu3 %v1020_v24  ;;  %v1292_v24 = vld [vmem:[%s1968_s3 + $0xf4] sm:$0xf0]  ;;  %v1188_v31 = vor.u32 %v1289_v21, %v1185_v22  ;;  %v1105_v21 = vld [vmem:[%s1968_s3 + $0x50] sm:$0xf0]  ;;  %v1111_v22 = vld [vmem:[%s1968_s3 + $0x48] sm:$0xf] }
  0x36   :  { %504 = vmatpush.bf16.msrb.mxu0 %v992_v28  ;;  %v1192_v34 = vor.u32 %v1292_v24, %v1191_v23  ;;  %v1272_v23 = vld [vmem:[%s1968_s3 + $0x54] sm:$0xf0]  ;;  %v1270_v24 = vld [vmem:[%s1968_s3 + $0x4c] sm:$0xf]  ;;  %v1081_v50 = vld [vmem:[%s1968_s3 + $0x18] sm:$0xf0] }
  0x37   :  { %517 = vmatpush.bf16.msrb.mxu1 %v996_v32  ;;  %v1167_v32 = vld [vmem:[%s1968_s3 + $0xc0] sm:$0xf] }
  0x38   :  { %530 = vmatpush.bf16.msrb.mxu2 %v1000_v33  ;;  %v1287_v33 = vld [vmem:[%s1968_s3 + $0xcc] sm:$0xf0] }
  0x39   :  { %543 = vmatpush.bf16.msrb.mxu3 %v1004_v36  ;;  %v1285_v36 = vld [vmem:[%s1968_s3 + $0xc4] sm:$0xf]  ;;  %v1168_v42 = vor.u32 %v1287_v33, %v1167_v32  ;;  %v1116_v32 = vor.u32 %v1270_v24, %v1113_v25 }
  0x3a   :  { %505 = vmatpush.bf16.msrb.mxu0 %v976_v40  ;;  %v1286_v40 = vld [vmem:[%s1968_s3 + $0xcc] sm:$0xf]  ;;  %v1172_v43 = vor.u32 %v1285_v36, %v1169_v37  ;;  %v1265_v33 = vld [vmem:[%s1968_s3 + $0x24] sm:$0xf]  ;;  %v1268_v36 = vld [vmem:[%s1968_s3 + $0x34] sm:$0xf0] }
  0x3b   :  { %518 = vmatpush.bf16.msrb.mxu1 %v980_v44  ;;  %v1151_v44 = vld [vmem:[%s1968_s3 + $0xa0] sm:$0xf]  ;;  %v1180_v47 = vor.u32 %v1286_v40, %v1177_v41  ;;  %v1266_v37 = vld [vmem:[%s1968_s3 + $0x2c] sm:$0xf] }
  0x3c   :  { %531 = vmatpush.bf16.msrb.mxu2 %v984_v45  ;;  %v1283_v45 = vld [vmem:[%s1968_s3 + $0xac] sm:$0xf0]  ;;  %v1071_v41 = vld [vmem:[%s1968_s3] sm:$0xf] }
  0x3d   :  { %544 = vmatpush.bf16.msrb.mxu3 %v988_v48  ;;  %v1281_v48 = vld [vmem:[%s1968_s3 + $0xa4] sm:$0xf]  ;;  %v1152_v54 = vor.u32 %v1283_v45, %v1151_v44  ;;  %v1100_v44 = vor.u32 %v1266_v37, %v1097_v38 }
  0x3e   :  { %506 = vmatpush.bf16.msrb.mxu0 %v960_v52  ;;  %v1282_v52 = vld [vmem:[%s1968_s3 + $0xac] sm:$0xf]  ;;  %v1156_v55 = vor.u32 %v1281_v48, %v1153_v49  ;;  %v1261_v45 = vld [vmem:[%s1968_s3 + $0x4] sm:$0xf]  ;;  %v1264_v48 = vld [vmem:[%s1968_s3 + $0x14] sm:$0xf0] }
  0x3f   :  { %519 = vmatpush.bf16.msrb.mxu1 %v964_v56  ;;  %v1135_v56 = vld [vmem:[%s1968_s3 + $0x80] sm:$0xf]  ;;  %v1164_v59 = vor.u32 %v1282_v52, %v1161_v53  ;;  %v1262_v49 = vld [vmem:[%s1968_s3 + $0xc] sm:$0xf] }
  0x40   :  { %532 = vmatpush.bf16.msrb.mxu2 %v968_v57  ;;  %v1279_v57 = vld [vmem:[%s1968_s3 + $0x8c] sm:$0xf0] }
  0x41   :  { %545 = vmatpush.bf16.msrb.mxu3 %v972_v60  ;;  %v1277_v60 = vld [vmem:[%s1968_s3 + $0x84] sm:$0xf]  ;;  %v1136_v3 = vor.u32 %v1279_v57, %v1135_v56 }
  0x42   :  { %507 = vmatpush.bf16.msrb.mxu0 %v944_v0  ;;  %v1278_v0 = vld [vmem:[%s1968_s3 + $0x8c] sm:$0xf]  ;;  %v1140_v4 = vor.u32 %v1277_v60, %v1137_v61 }
  0x43   :  { %520 = vmatpush.bf16.msrb.mxu1 %v948_v5  ;;  %v1119_v5 = vld [vmem:[%s1968_s3 + $0x60] sm:$0xf]  ;;  %v1148_v8 = vor.u32 %v1278_v0, %v1145_v1 }
  0x44   :  { %533 = vmatpush.bf16.msrb.mxu2 %v952_v6  ;;  %v1275_v6 = vld [vmem:[%s1968_s3 + $0x6c] sm:$0xf0] }
  0x45   :  { %546 = vmatpush.bf16.msrb.mxu3 %v956_v9  ;;  %v1273_v9 = vld [vmem:[%s1968_s3 + $0x64] sm:$0xf] }
  0x5e   :  { %v43_v10 = vpop.permute.xlu2 %42 }
  0x5f   :  { %vm44_vm7 = vcmp.eq.s32.totalorder %v21_v14, %v43_v10  ;;  %v1121_v10 = vld [vmem:[%s1968_s3 + $0x70] sm:$0xf0] }
  0x67   :  { %v48_v2 = vpop.permute.xlu2 %47 }
  0x68   :  { %vm49_vm9 = vcmp.eq.s32.totalorder %v21_v14, %v48_v2  ;;  %v1129_v2 = vld [vmem:[%s1968_s3 + $0x78] sm:$0xf0] }
  0x69   :  { %v1132_v19 = vor.u32 %v1274_v13, %v1129_v2 }
  0x70   :  { %v58_v17 = vpop.permute.xlu2 %57 }
  0x71   :  { %vm59_vm10 = vcmp.eq.s32.totalorder %v21_v14, %v58_v17  ;;  %v1271_v17 = vld [vmem:[%s1968_s3 + $0x4c] sm:$0xf0] }
  0x74   :  { %v33_v11 = vpop.permute.xlu1 %32  ;;  %v24_v12 = vpop.permute.xlu0 %23 }
  0x75   :  { %vm25_vm0 = vcmp.eq.s32.totalorder %v21_v14, %v24_v12  ;;  %vm34_vm2 = vcmp.eq.s32.totalorder %v21_v14, %v33_v11  ;;  %v1127_v11 = vld [vmem:[%s1968_s3 + $0x68] sm:$0xf]  ;;  %v1276_v12 = vld [vmem:[%s1968_s3 + $0x74] sm:$0xf0] }
  0x7d   :  { %v38_v15 = vpop.permute.xlu1 %37  ;;  %v28_v16 = vpop.permute.xlu0 %27 }
  0x7e   :  { %vm29_vm1 = vcmp.eq.s32.totalorder %v21_v14, %v28_v16  ;;  %vm39_vm4 = vcmp.eq.s32.totalorder %v21_v14, %v38_v15  ;;  %v1124_v15 = vor.u32 %v1273_v9, %v1121_v10  ;;  %v1103_v16 = vld [vmem:[%s1968_s3 + $0x40] sm:$0xf] }
  0x7f   :  { %vm30_vm3 = vmor %vm25_vm0, %vm29_vm1  ;;  %v1104_v26 = vor.u32 %v1271_v17, %v1103_v16 }
  0x80   :  { %vm35_vm5 = vmor %vm30_vm3, %vm34_vm2 }
  0x81   :  { %vm40_vm6 = vmor %vm35_vm5, %vm39_vm4 }
  0x82   :  { %vm45_vm8 = vmor %vm40_vm6, %vm44_vm7 }
  0x83   :  { %vm50_vm11 = vmor %vm45_vm8, %vm49_vm9 }
  0x86   :  { %v53_v18 = vpop.permute.xlu1 %52 }
  0x87   :  { %vm54_vm12 = vcmp.eq.s32.totalorder %v21_v14, %v53_v18  ;;  %v1120_v14 = vor.u32 %v1275_v6, %v1119_v5  ;;  %v1128_v18 = vor.u32 %v1276_v12, %v1127_v11 }
  0x88   :  { %vm55_vm13 = vmor %vm50_vm11, %vm54_vm12 }
  0x89   :  { %vm60_vm14 = vmor %vm55_vm13, %vm59_vm10 }
  0x8a   :  { %v812_v28 = vsel %vm60_vm14, 1.0, %v1319_v27  ;;  %v1108_v27 = vor.u32 %v1269_v20, %v1105_v21 }
  0x8b   :  { %v1771_v29 = vpack.c.bf16 %v812_v28, %v812_v28  ;;  %v1087_v28 = vld [vmem:[%s1968_s3 + $0x20] sm:$0xf] }
  0x8d   :  { %296 = vmatmul.bf16.vlgmr.msra.gmra.mxu0 %v1771_v29  ;;  %309 = vmatmul.bf16.vlgmr.msra.gmra.mxu1 %v1771_v29 }
  0x8e   :  { %322 = vmatmul.bf16.vlgmr.msra.gmra.mxu2 %v1771_v29  ;;  %335 = vmatmul.bf16.vlgmr.msra.gmra.mxu3 %v1771_v29 }
  0x8f   :  { %744 = vmatpush.bf16.msra.mxu0 %v1184_v30  ;;  %757 = vmatpush.bf16.msra.mxu1 %v1188_v31  ;;  %v1267_v30 = vld [vmem:[%s1968_s3 + $0x2c] sm:$0xf0]  ;;  %v1112_v31 = vor.u32 %v1272_v23, %v1111_v22 }
  0x90   :  { %770 = vmatpush.bf16.msra.mxu2 %v1192_v34  ;;  %783 = vmatpush.bf16.msra.mxu3 %v1196_v35  ;;  %v1089_v34 = vld [vmem:[%s1968_s3 + $0x30] sm:$0xf0]  ;;  %v1095_v35 = vld [vmem:[%s1968_s3 + $0x28] sm:$0xf]  ;;  %v1088_v39 = vor.u32 %v1267_v30, %v1087_v28 }
  0x91   :  { %v1092_v40 = vor.u32 %v1265_v33, %v1089_v34 }
  0x93   :  { %745 = vmatpush.bf16.msra.mxu0 %v1168_v42  ;;  %758 = vmatpush.bf16.msra.mxu1 %v1172_v43  ;;  %v1263_v42 = vld [vmem:[%s1968_s3 + $0xc] sm:$0xf0]  ;;  %v1096_v43 = vor.u32 %v1268_v36, %v1095_v35 }
  0x94   :  { %771 = vmatpush.bf16.msra.mxu2 %v1176_v46  ;;  %784 = vmatpush.bf16.msra.mxu3 %v1180_v47  ;;  %v1073_v46 = vld [vmem:[%s1968_s3 + $0x10] sm:$0xf0]  ;;  %v1079_v47 = vld [vmem:[%s1968_s3 + $0x8] sm:$0xf]  ;;  %v1072_v51 = vor.u32 %v1263_v42, %v1071_v41 }
  0x95   :  { %v1076_v52 = vor.u32 %v1261_v45, %v1073_v46  ;;  %v1080_v53 = vor.u32 %v1264_v48, %v1079_v47 }
  0x97   :  { %746 = vmatpush.bf16.msra.mxu0 %v1152_v54  ;;  %759 = vmatpush.bf16.msra.mxu1 %v1156_v55  ;;  %v1084_v54 = vor.u32 %v1262_v49, %v1081_v50 }
  0x98   :  { %772 = vmatpush.bf16.msra.mxu2 %v1160_v58  ;;  %785 = vmatpush.bf16.msra.mxu3 %v1164_v59 }
  0x9b   :  { %747 = vmatpush.bf16.msra.mxu0 %v1136_v3  ;;  %760 = vmatpush.bf16.msra.mxu1 %v1140_v4 }
  0x9c   :  { %773 = vmatpush.bf16.msra.mxu2 %v1144_v7  ;;  %786 = vmatpush.bf16.msra.mxu3 %v1148_v8 }
  0x9d   :  { %508 = vmatmul.bf16.vlgmr.msrb.gmra.mxu0 %v1771_v29  ;;  %521 = vmatmul.bf16.vlgmr.msrb.gmra.mxu1 %v1771_v29 }
  0x9e   :  { %534 = vmatmul.bf16.vlgmr.msrb.gmra.mxu2 %v1771_v29  ;;  %547 = vmatmul.bf16.vlgmr.msrb.gmra.mxu3 %v1771_v29 }
  0x9f   :  { %748 = vmatpush.bf16.msra.mxu0 %v1120_v14  ;;  %761 = vmatpush.bf16.msra.mxu1 %v1124_v15 }
  0xa0   :  { %774 = vmatpush.bf16.msra.mxu2 %v1128_v18  ;;  %787 = vmatpush.bf16.msra.mxu3 %v1132_v19 }
  0xa3   :  { %749 = vmatpush.bf16.msra.mxu0 %v1104_v26  ;;  %762 = vmatpush.bf16.msra.mxu1 %v1108_v27 }
  0xa4   :  { %775 = vmatpush.bf16.msra.mxu2 %v1112_v31  ;;  %788 = vmatpush.bf16.msra.mxu3 %v1116_v32 }
  0xa7   :  { %750 = vmatpush.bf16.msra.mxu0 %v1088_v39  ;;  %763 = vmatpush.bf16.msra.mxu1 %v1092_v40 }
  0xa8   :  { %776 = vmatpush.bf16.msra.mxu2 %v1096_v43  ;;  %789 = vmatpush.bf16.msra.mxu3 %v1100_v44 }
  0xab   :  { %751 = vmatpush.bf16.msra.mxu0 %v1072_v51  ;;  %764 = vmatpush.bf16.msra.mxu1 %v1076_v52 }
  0xac   :  { %777 = vmatpush.bf16.msra.mxu2 %v1080_v53  ;;  %790 = vmatpush.bf16.msra.mxu3 %v1084_v54 }
  0xae   :  { %752 = vmatmul.bf16.vlgmr.msra.gmra.mxu0 %v1771_v29  ;;  %765 = vmatmul.bf16.vlgmr.msra.gmra.mxu1 %v1771_v29 }
  0xaf   :  { %778 = vmatmul.bf16.vlgmr.msra.gmra.mxu2 %v1771_v29  ;;  %791 = vmatmul.bf16.vlgmr.msra.gmra.mxu3 %v1771_v29 }
 0x10a   :  { %v297_v55 = vpop.f32.mrf.mxu0  ;;  %v310_v56 = vpop.f32.mrf.mxu1 }
 0x111   :  { %v323_v57 = vpop.f32.mrf.mxu2  ;;  %v336_v58 = vpop.f32.mrf.mxu3 }
 0x112   :  { %v299_v59 = vpop.f32.mrf.mxu0  ;;  %v312_v60 = vpop.f32.mrf.mxu1 }
 0x119   :  { %v325_v61 = vpop.f32.mrf.mxu2  ;;  %v338_v62 = vpop.f32.mrf.mxu3 }
 0x11a   :  { %v509_v63 = vpop.f32.mrf.mxu0  ;;  %v522_v0 = vpop.f32.mrf.mxu1 }
 0x11b   :  { %v510_v8 = vadd.f32 %v509_v63, %v297_v55  ;;  %v523_v9 = vadd.f32 %v522_v0, %v310_v56 }
 0x121   :  { %v535_v1 = vpop.f32.mrf.mxu2  ;;  %v548_v3 = vpop.f32.mrf.mxu3 }
 0x122   :  { %v511_v4 = vpop.f32.mrf.mxu0  ;;  %v524_v5 = vpop.f32.mrf.mxu1  ;;  %v536_v13 = vadd.f32 %v535_v1, %v323_v57  ;;  %v549_v2 = vadd.f32 %v548_v3, %v336_v58 }
 0x129   :  { %v537_v6 = vpop.f32.mrf.mxu2  ;;  %v550_v7 = vpop.f32.mrf.mxu3 }
 0x12b   :  { %v753_v10 = vpop.f32.mrf.mxu0  ;;  %v766_v29 = vpop.f32.mrf.mxu1 }
 0x12c   :  { %v796_v11 = vadd.f32 %v753_v10, %v510_v8  ;;  %v797_v12 = vadd.f32 %v766_v29, %v523_v9 }
 0x12e   :  { %800 = vst [vmem:[%s1969_s4] sm:$0xff] %v796_v11 }
 0x12f   :  { %801 = vst [vmem:[%s1969_s4 + $0x8] sm:$0xff] %v797_v12 }
 0x132   :  { %v779_v14 = vpop.f32.mrf.mxu2  ;;  %v792_v15 = vpop.f32.mrf.mxu3 }
 0x133   :  { %v798_v16 = vadd.f32 %v779_v14, %v536_v13  ;;  %v799_v17 = vadd.f32 %v792_v15, %v549_v2  ;;  %v755_v18 = vpop.f32.mrf.mxu0  ;;  %v768_v19 = vpop.f32.mrf.mxu1 }
 0x135   :  { %802 = vst [vmem:[%s1970_s5] sm:$0xff] %v798_v16 }
 0x136   :  { %803 = vst [vmem:[%s1970_s5 + $0x8] sm:$0xff] %v799_v17 }
 0x13a   :  { %v781_v20 = vpop.f32.mrf.mxu2  ;;  %v794_v21 = vpop.f32.mrf.mxu3 }

</bundles_post_ra>
